<compile_context>
chip_gen: v7x
topology: tpu7x:2x2x1
jax: 0.10.0
libtpu: 0.0.40
codegen_flags: <defaults>
</compile_context>

<pallas_src>
import functools

import jax
import jax.numpy as jnp
from jax.experimental import pallas as pl
from jax.experimental.pallas import tpu as pltpu


def _round_up(x, m):
    return ((x + m - 1) // m) * m


def _next_pow2(x):
    return 1 if x <= 1 else 1 << (x - 1).bit_length()


@functools.lru_cache(maxsize=None)
def _build_eval(n_pack, dim, pack, negate):
    """Jitted eval(Xp: (n_pack*pack, dim) f32) -> (n_pack*pack,) f32 of sign*f_true."""
    width = pack * dim
    sign = -1.0 if negate else 1.0

    # Tile: biggest that comfortably fits VMEM; keep >= 2 grid steps when possible so
    # both v7x TensorCores get work (no-op on single-TC v5e/v6e).
    if n_pack <= 8:
        tile_p = n_pack
    else:
        tile_p = min(8192, _round_up(-(-n_pack // 2), 8))
    grid = (n_pack // tile_p,)

    def kernel(x_ref, f_ref):
        x = x_ref[...]                                   # (tile_p, width) f32
        x2 = x * x
        # Constant block-diagonal selector (width, pack): column j selects segment j.
        row = jax.lax.broadcasted_iota(jnp.int32, (width, pack), 0)
        col = jax.lax.broadcasted_iota(jnp.int32, (width, pack), 1)
        sel = jnp.where((row >= col * dim) & (row < (col + 1) * dim),
                        jnp.float32(sign), jnp.float32(0.0))
        # Segmented sum on the (otherwise idle) MXU; HIGHEST keeps full f32 accuracy.
        f_ref[...] = jnp.dot(x2, sel,
                             preferred_element_type=jnp.float32,
                             precision=jax.lax.Precision.HIGHEST)

    call = pl.pallas_call(
        kernel,
        out_shape=jax.ShapeDtypeStruct((n_pack, pack), jnp.float32),
        grid=grid,
        in_specs=[pl.BlockSpec((tile_p, width), lambda i: (i, 0))],
        out_specs=pl.BlockSpec((tile_p, pack), lambda i: (i, 0)),
        compiler_params=pltpu.CompilerParams(
            dimension_semantics=("parallel",),
            vmem_limit_bytes=32 * 1024 * 1024,
            allow_input_fusion=[True],
        ),
        cost_estimate=pl.CostEstimate(
            flops=2 * n_pack * width,
            transcendentals=0,
            bytes_accessed=n_pack * width * 4 + n_pack * pack * 4,
        ),
    )

    def eval_padded(Xp):
        Xr = Xp.reshape(n_pack, width)      # free row-major view (fused into input DMA)
        return call(Xr).reshape(-1)         # (n_pack * pack,)

    return jax.jit(eval_padded)


class BaseTestProblemPallas:
    """JAX/Pallas re-implementation of botorch BaseTestProblem.forward."""

    # Deterministic problem definition (Sphere in `dim` dimensions).
    dim = 32
    _bounds = [(-5.12, 5.12)] * 32
    _check_grad_at_opt = True

    def __init__(self, noise_std=None, negate=False):
        self.noise_std = noise_std
        self.negate = negate
        # register_buffer('bounds', tensor(_bounds).transpose(-1, -2)) -> (2, dim)
        self.bounds = jnp.asarray(self._bounds, dtype=jnp.float32).T

    def __call__(self, X, noise=True, seed=0):
        X = jnp.asarray(X, dtype=jnp.float32)
        batch = X.ndim > 1
        X2 = X if batch else X[None, :]
        n, d = X2.shape
        assert d == self.dim, f"expected last dim {self.dim}, got {d}"

        # Lane packing factor (points per 128-lane row).
        pack = 128 // d if (d <= 128 and 128 % d == 0) else 1
        # Bucket the batch size -> compiled kernels are reused across growing n.
        n_pack = max(8, _next_pow2(-(-n // pack)))
        n_pad_pts = n_pack * pack

        fwd = _build_eval(n_pack, d, pack, bool(self.negate))
        Xp = X2 if n_pad_pts == n else jnp.pad(X2, ((0, n_pad_pts - n), (0, 0)))
        f = fwd(Xp)[:n]                               # sign * f_true, shape (n,)

        if noise and self.noise_std is not None:
            # TODO(synk): torch.randn_like draws from a global RNG stream; here the
            # noise is deterministic per explicit `seed` argument.
            sign = -1.0 if self.negate else 1.0
            eps = jax.random.normal(jax.random.PRNGKey(seed), (n,), dtype=jnp.float32)
            f = f + jnp.float32(sign * float(self.noise_std)) * eps
        return f if batch else f[0]


if __name__ == "__main__":
    key = jax.random.PRNGKey(0)
    n, dim = 8, BaseTestProblemPallas.dim
    X = jax.random.uniform(key, (n, dim), jnp.float32, minval=-5.12, maxval=5.12)
    ref = jnp.sum(X * X, axis=-1)

    # Noiseless, non-negated: check against pure-JAX reference.
    prob = BaseTestProblemPallas(noise_std=None, negate=False)
    f = jax.block_until_ready(prob(X, noise=True))
    assert f.shape == (n,)
    assert jnp.allclose(f, ref, rtol=1e-5, atol=1e-5), (f, ref)

    # Noisy + negated path (exercises noise epilogue and negation baked into selector).
    prob_noisy = BaseTestProblemPallas(noise_std=0.1, negate=True)
    f_noisy = jax.block_until_ready(prob_noisy(X, noise=True, seed=1234))
    assert f_noisy.shape == (n,)
    # Negated noisy value should be close to -ref (within a few noise stds).
    assert jnp.all(jnp.abs(f_noisy + ref) < 1.0)

    # noise=False on a noisy problem -> exact negated values.
    f_nn = jax.block_until_ready(prob_noisy(X, noise=False))
    assert jnp.allclose(f_nn, -ref, rtol=1e-5, atol=1e-5)

    # Non-batch input path: 1-D X -> scalar output.
    f_scalar = jax.block_until_ready(prob(X[0], noise=True))
    assert f_scalar.ndim == 0
    assert jnp.allclose(f_scalar, ref[0], rtol=1e-5, atol=1e-5)

    print("KERNEL_OK")
</pallas_src>

<mosaic_0001>
module attributes {stable_mosaic.version = 11 : i64} {
  func.func @kernel(%arg0: i32, %arg1: memref<8x128xf32, #tpu.memory_space<vmem>>, %arg2: memref<8x4xf32, #tpu.memory_space<vmem>>) attributes {dimension_semantics = [#tpu.dimension_semantics<parallel>], iteration_bounds = array<i64: 1>, scalar_prefetch = 0 : i64, scratch_operands = 0 : i64, tpu.core_type = #tpu.core_type<tc>, window_params = [{transform_indices = @transform_0, window_bounds = array<i64: 8, 128>}, {transform_indices = @transform_1, window_bounds = array<i64: 8, 4>}]} {
    %c0 = arith.constant 0 : index
    %c0_0 = arith.constant 0 : index
    %0 = vector.load %arg1[%c0, %c0_0] : memref<8x128xf32, #tpu.memory_space<vmem>>, vector<8x128xf32>
    %1 = arith.mulf %0, %0 : vector<8x128xf32>
    %2 = tpu.iota {dimensions = array<i32: 0>} : vector<128x4xi32>
    %3 = tpu.iota {dimensions = array<i32: 1>} : vector<128x4xi32>
    %c32_i32 = arith.constant 32 : i32
    %4 = vector.broadcast %c32_i32 : i32 to vector<128x4xi32>
    %5 = arith.muli %3, %4 : vector<128x4xi32>
    %6 = arith.cmpi sge, %2, %5 : vector<128x4xi32>
    %c1_i32 = arith.constant 1 : i32
    %7 = vector.broadcast %c1_i32 : i32 to vector<128x4xi32>
    %8 = arith.addi %3, %7 : vector<128x4xi32>
    %c32_i32_1 = arith.constant 32 : i32
    %9 = vector.broadcast %c32_i32_1 : i32 to vector<128x4xi32>
    %10 = arith.muli %8, %9 : vector<128x4xi32>
    %11 = arith.cmpi slt, %2, %10 : vector<128x4xi32>
    %12 = arith.andi %6, %11 : vector<128x4xi1>
    %cst = arith.constant 1.000000e+00 : f32
    %cst_2 = arith.constant 0.000000e+00 : f32
    %13 = vector.broadcast %cst : f32 to vector<128x4xf32>
    %14 = vector.broadcast %cst_2 : f32 to vector<128x4xf32>
    %15 = arith.select %12, %13, %14 : vector<128x4xi1>, vector<128x4xf32>
    %cst_3 = arith.constant dense<0.000000e+00> : vector<8x4xf32>
    %16 = tpu.matmul %1, %15, %cst_3 {dimension_numbers = #tpu.dot_dimension_numbers<[1], [0], [0], [1], [0, 0, 1, 1], [], []>, precision = #tpu.contract_precision<fp32>} : vector<8x128xf32>, vector<128x4xf32>, vector<8x4xf32> -> vector<8x4xf32>
    %c0_4 = arith.constant 0 : index
    %c0_5 = arith.constant 0 : index
    %17 = vector.load %arg2[%c0_4, %c0_5] : memref<8x4xf32, #tpu.memory_space<vmem>>, vector<8x4xf32>
    tpu.vector_store %arg2[%c0_4, %c0_5], %16 {strides = array<i32>} : memref<8x4xf32, #tpu.memory_space<vmem>>, vector<8x4xf32>,
    return
  }
  func.func @transform_0(%arg0: i32) -> (i32, i32) {
    %c0_i32 = arith.constant 0 : i32
    %c0_i32_0 = arith.constant 0 : i32
    return %arg0, %c0_i32 : i32, i32
  }
  func.func @transform_1(%arg0: i32) -> (i32, i32) {
    %c0_i32 = arith.constant 0 : i32
    %c0_i32_0 = arith.constant 0 : i32
    return %arg0, %c0_i32 : i32, i32
  }
}

</mosaic_0001>

<bundles_post_ra>
// kernel: eval_padded.1
= control target key start
LH: loop header
LB: loop body
LE: loop exit
PB: predicated region body
PF: predicated region fallthrough
CT: control target
= control target key end

     0   :  { %v10_v0 = vlaneseq  ;;  %v1164_v1 = vmov 0.0|0.0   ;;  %vm1660_vm0 = vmmov 0   ;;  %v1166_v4 = vmov 0.0   ;;  %s1658_s0 = inlined_call_operand.vmem [shape: f32[8,128], index: 0, kind: input, shape index: {}]   ;;  %s1659_s1 = inlined_call_operand.vmem [shape: f32[8,4], index: 1, kind: output, shape index: {}]  }
   0x1   :  { %1007 = vmatprep.subr.bf16.mxu1 %v1164_v1  ;;  %1079 = vmatprep.subr.bf16.mxu0 %v1164_v1  ;;  %v1670_v15 = vmov 0  ;;  %v1167_v17 = vmov 1.0|1.0   ;;  %v1676_v21 = vmov 0  ;;  %v8_v26 = vld [vmem:[%s1658_s0] sm:$0xff]  ;;  %v1682_v28 = vmov 0 }
   0x2   :  { %v1180_v2 = vshrl.u32 %v10_v0, 7  ;;  %v28_v3 = vand.u32 127, %v10_v0  ;;  %829 = vmatprep.mubr.msk.f32.mxu1 %vm1660_vm0, %v1166_v4  ;;  %934 = vmatprep.mubr.msk.f32.mxu0 %vm1660_vm0, %v1166_v4  ;;  %v1686_v33 = vmov 0  ;;  %v9_v34 = vmul.f32 %v8_v26, %v8_v26 }
   0x4   :  { %v12_v5 = vadd.s32 8, %v1180_v2  ;;  %v1187_v6 = vmul.u32 32, %v28_v3  ;;  %v46_v7 = vadd.s32 1, %v28_v3  ;;  %v13_v8 = vadd.s32 16, %v1180_v2 }
   0x5   :  { %v14_v10 = vadd.s32 24, %v1180_v2  ;;  %v15_v11 = vadd.s32 32, %v1180_v2  ;;  %v16_v13 = vadd.s32 40, %v1180_v2  ;;  %v17_v16 = vadd.s32 48, %v1180_v2 }
   0x6   :  { %vm30_vm1 = vcmp.ge.s32.totalorder %v1180_v2, %v1187_v6  ;;  %v1192_v9 = vmul.u32 32, %v46_v7  ;;  %vm31_vm2 = vcmp.ge.s32.totalorder %v12_v5, %v1187_v6  ;;  %vm32_vm6 = vcmp.ge.s32.totalorder %v13_v8, %v1187_v6 }
   0x7   :  { %vm33_vm9 = vcmp.ge.s32.totalorder %v14_v10, %v1187_v6  ;;  %vm34_vm13 = vcmp.ge.s32.totalorder %v15_v11, %v1187_v6  ;;  %v18_v19 = vadd.s32 56, %v1180_v2  ;;  %v19_v22 = vadd.s32 64, %v1180_v2 }
   0x8   :  { %vm48_vm3 = vcmp.lt.s32.totalorder %v1180_v2, %v1192_v9  ;;  %vm49_vm4 = vcmp.lt.s32.totalorder %v12_v5, %v1192_v9  ;;  %vm50_vm7 = vcmp.lt.s32.totalorder %v13_v8, %v1192_v9  ;;  %vm51_vm10 = vcmp.lt.s32.totalorder %v14_v10, %v1192_v9 }
   0x9   :  { %vm1200_vm5 = vmand %vm30_vm1, %vm48_vm3  ;;  %vm52_vm14 = vcmp.lt.s32.totalorder %v15_v11, %v1192_v9  ;;  %vm35_vm1 = vcmp.ge.s32.totalorder %v16_v13, %v1187_v6  ;;  %v20_v24 = vadd.s32 72, %v1180_v2  ;;  %v21_v29 = vadd.s32 80, %v1180_v2 }
   0xa   :  { %vm1207_vm8 = vmand %vm31_vm2, %vm49_vm4  ;;  %vm53_vm2 = vcmp.lt.s32.totalorder %v16_v13, %v1192_v9  ;;  %v80_v27 = vsel %vm1200_vm5, 1.0, %v1166_v4  ;;  %v22_v32 = vadd.s32 88, %v1180_v2  ;;  %v23_v39 = vadd.s32 96, %v1180_v2 }
   0xb   :  { %vm1217_vm11 = vmpackc.low %vm1207_vm8, %vm1200_vm5  ;;  %v81_v30 = vsel %vm1207_vm8, 1.0, %v1166_v4  ;;  %vm57_vm8 = vcmp.lt.s32.totalorder %v20_v24, %v1192_v9  ;;  %v1306_v35 = vsub.f32 %v80_v27, %v80_v27  ;;  %v24_v41 = vadd.s32 104, %v1180_v2 }
   0xc   :  { %v1671_v15 = vsel %vm1217_vm11, 4294967295, %v1670_v15  ;;  %1009 = vmatpush3.bf16.msk.msra.mxu1 %vm1217_vm11, %v1167_v17  ;;  %1081 = vmatpush3.bf16.msk.msra.mxu0 %vm1217_vm11, %v1167_v17  ;;  %vm1228_vm12 = vmand %vm32_vm6, %vm50_vm7  ;;  %vm36_vm6 = vcmp.ge.s32.totalorder %v17_v16, %v1187_v6  ;;  %vm54_vm7 = vcmp.lt.s32.totalorder %v17_v16, %v1192_v9  ;;  %v1322_v37 = vsub.f32 %v81_v30, %v81_v30 }
   0xd   :  { %1010 = vmatprep.subr.bf16.mxu1 %v1164_v1  ;;  %1082 = vmatprep.subr.bf16.mxu0 %v1164_v1  ;;  %vm1237_vm15 = vmand %vm33_vm9, %vm51_vm10  ;;  %vm37_vm10 = vcmp.ge.s32.totalorder %v18_v19, %v1187_v6  ;;  %vm41_vm11 = vcmp.ge.s32.totalorder %v22_v32, %v1187_v6  ;;  %v1348_v43 = vand.u32 4294901760, %v9_v34  ;;  %v173_v44 = vand.u32 4294901760, %v1306_v35 }
   0xe   :  { %vm1247_vm3 = vmpackc.low %vm1237_vm15, %vm1228_vm12  ;;  %v82_v45 = vsel %vm1228_vm12, 1.0, %v1166_v4  ;;  %v179_v47 = vand.u32 4294901760, %v1322_v37  ;;  %v83_v48 = vsel %vm1237_vm15, 1.0, %v1166_v4  ;;  %v25_v50 = vadd.s32 112, %v1180_v2 }
   0xf   :  { %v1677_v21 = vsel %vm1247_vm3, 4294967295, %v1676_v21  ;;  %vm1252_vm4 = vmand %vm34_vm13, %vm52_vm14  ;;  %vm55_vm13 = vcmp.lt.s32.totalorder %v18_v19, %v1192_v9  ;;  %v26_v53 = vadd.s32 120, %v1180_v2  ;;  %v1392_v54 = vsub.f32 %v9_v34, %v1348_v43 }
  0x10   :  { %1012 = vmatpush3.bf16.msk.msra.mxu1 %vm1247_vm3, %v1167_v17  ;;  %1084 = vmatpush3.bf16.msk.msra.mxu0 %vm1247_vm3, %v1167_v17  ;;  %vm1265_vm9 = vmand %vm35_vm1, %vm53_vm2  ;;  %vm38_vm1 = vcmp.ge.s32.totalorder %v19_v22, %v1187_v6  ;;  %vm56_vm2 = vcmp.lt.s32.totalorder %v19_v22, %v1192_v9  ;;  %vm39_vm3 = vcmp.ge.s32.totalorder %v20_v24, %v1187_v6  ;;  %v84_v51 = vsel %vm1252_vm4, 1.0, %v1166_v4 }
  0x11   :  { %1013 = vmatprep.subr.bf16.mxu1 %v1164_v1  ;;  %1085 = vmatprep.subr.bf16.mxu0 %v1164_v1  ;;  %vm1283_vm14 = vmpackc.low %vm1265_vm9, %vm1252_vm4  ;;  %v1394_v55 = vsub.f32 %v82_v45, %v82_v45  ;;  %v1396_v56 = vsub.f32 %v83_v48, %v83_v48  ;;  %v174_v58 = vsub.f32 %v1306_v35, %v173_v44  ;;  %v85_v60 = vsel %vm1265_vm9, 1.0, %v1166_v4 }
  0x12   :  { %v1683_v28 = vsel %vm1283_vm14, 4294967295, %v1682_v28  ;;  %vm1293_vm5 = vmand %vm36_vm6, %vm54_vm7  ;;  %v180_v59 = vsub.f32 %v1322_v37, %v179_v47  ;;  %v1427_v62 = vsub.f32 %v84_v51, %v84_v51  ;;  %vm44_vm4 = vcmp.ge.s32.totalorder %v25_v50, %v1187_v6 }
  0x13   :  { %vm1300_vm0 = vmand %vm37_vm10, %vm55_vm13  ;;  %vm40_vm10 = vcmp.ge.s32.totalorder %v21_v29, %v1187_v6  ;;  %vm58_vm13 = vcmp.lt.s32.totalorder %v21_v29, %v1192_v9  ;;  %v86_v63 = vsel %vm1293_vm5, 1.0, %v1166_v4  ;;  %vm62_vm9 = vcmp.lt.s32.totalorder %v25_v50, %v1192_v9 }
  0x14   :  { %v1687_v33 = vsel %vm1300_vm0, 4294967295, %v1686_v33  ;;  %1015 = vmatpush3.bf16.msk.msra.mxu1 %vm1283_vm14, %v1167_v17  ;;  %1087 = vmatpush3.bf16.msk.msra.mxu0 %vm1283_vm14, %v1167_v17  ;;  %vm1318_vm6 = vmpackc.low %vm1300_vm0, %vm1293_vm5  ;;  %vm59_vm0 = vcmp.lt.s32.totalorder %v22_v32, %v1192_v9  ;;  %v163_v2 = vand.u32 4294901760, %v1392_v54  ;;  %v185_v3 = vand.u32 4294901760, %v1394_v55 }
  0x15   :  { %1016 = vmatprep.subr.bf16.mxu1 %v1164_v1  ;;  %1088 = vmatprep.subr.bf16.mxu0 %v1164_v1  ;;  %vm1326_vm7 = vmand %vm38_vm1, %vm56_vm2  ;;  %vm42_vm2 = vcmp.ge.s32.totalorder %v23_v39, %v1187_v6  ;;  %v191_v5 = vand.u32 4294901760, %v1396_v56  ;;  %v1442_v7 = vsub.f32 %v85_v60, %v85_v60  ;;  %v1458_v10 = vsub.f32 %v86_v63, %v86_v63 }
  0x16   :  { %vm1333_vm14 = vmand %vm39_vm3, %vm57_vm8  ;;  %vm60_vm8 = vcmp.lt.s32.totalorder %v23_v39, %v1192_v9  ;;  %v175_v12 = vand.u32 4294901760, %v174_v58  ;;  %v181_v13 = vand.u32 4294901760, %v180_v59  ;;  %v197_v18 = vand.u32 4294901760, %v1427_v62 }
  0x17   :  { %vm1344_vm1 = vmpackc.low %vm1333_vm14, %vm1326_vm7  ;;  %v88_v19 = vsel %vm1326_vm7, 1.0, %v1166_v4  ;;  %v89_v20 = vsel %vm1333_vm14, 1.0, %v1166_v4  ;;  %v164_v22 = vsub.f32 %v1392_v54, %v163_v2  ;;  %v192_v23 = vsub.f32 %v1396_v56, %v191_v5 }
  0x18   :  { %1018 = vmatpush3.bf16.msk.msra.mxu1 %vm1318_vm6, %v1167_v17  ;;  %1090 = vmatpush3.bf16.msk.msra.mxu0 %vm1318_vm6, %v1167_v17  ;;  %vm1360_vm3 = vmand %vm40_vm10, %vm58_vm13  ;;  %vm43_vm10 = vcmp.ge.s32.totalorder %v24_v41, %v1187_v6  ;;  %vm61_vm13 = vcmp.lt.s32.totalorder %v24_v41, %v1192_v9  ;;  %v209_v24 = vand.u32 4294901760, %v1458_v10  ;;  %v1507_v27 = vsub.f32 %v88_v19, %v88_v19 }
  0x19   :  { %1019 = vmatprep.subr.bf16.mxu1 %v1164_v1  ;;  %1091 = vmatprep.subr.bf16.mxu0 %v1164_v1  ;;  %vm1370_vm12 = vmand %vm41_vm11, %vm59_vm0  ;;  %v1509_v29 = vsub.f32 %v89_v20, %v89_v20  ;;  %v90_v30 = vsel %vm1360_vm3, 1.0, %v1166_v4  ;;  %v165_v32 = vand.u32 4294901760, %v164_v22  ;;  %v198_v34 = vsub.f32 %v1427_v62, %v197_v18 }
  0x1a   :  { %vm1386_vm0 = vmpackc.low %vm1370_vm12, %vm1360_vm3  ;;  %v91_v31 = vsel %vm1370_vm12, 1.0, %v1166_v4  ;;  %v1104_v38 = vpack.c.bf16 %v179_v47, %v173_v44  ;;  %v193_v40 = vand.u32 4294901760, %v192_v23  ;;  %v221_v45 = vand.u32 4294901760, %v1507_v27 }
  0x1b   :  { %vm1404_vm11 = vmand %vm42_vm2, %vm60_vm8  ;;  %vm1706_vm2 = vnez %v1687_v33  ;;  %vm45_vm8 = vcmp.ge.s32.totalorder %v26_v53, %v1187_v6  ;;  %v186_v6 = vsub.f32 %v1394_v55, %v185_v3  ;;  %v1032_v33 = vpack.c.bf16 %v181_v13, %v175_v12 }
  0x1c   :  { %1021 = vmatpush3.bf16.msk.msra.mxu1 %vm1344_vm1, %v1167_v17  ;;  %1093 = vmatpush3.bf16.msk.msra.mxu0 %vm1344_vm1, %v1167_v17  ;;  %vm1423_vm15 = vmand %vm43_vm10, %vm61_vm13  ;;  %v87_v0 = vsel %vm1706_vm2, 1.0, %v1166_v4  ;;  %vm63_vm10 = vcmp.lt.s32.totalorder %v26_v53, %v1192_v9  ;;  %v203_v9 = vand.u32 4294901760, %v1442_v7  ;;  %v227_v46 = vand.u32 4294901760, %v1509_v29 }
  0x1d   :  { %1022 = vmatprep.subr.bf16.mxu1 %v1164_v1  ;;  %1094 = vmatprep.subr.bf16.mxu0 %v1164_v1  ;;  %vm1454_vm5 = vmpackc.low %vm1423_vm15, %vm1404_vm11  ;;  %v1468_v14 = vsub.f32 %v87_v0, %v87_v0  ;;  %v187_v39 = vand.u32 4294901760, %v186_v6  ;;  %v1533_v48 = vsub.f32 %v90_v30, %v90_v30  ;;  %v1535_v49 = vsub.f32 %v91_v31, %v91_v31 }
  0x1e   :  { %vm1464_vm13 = vmand %vm44_vm4, %vm62_vm9  ;;  %v204_v41 = vsub.f32 %v1442_v7, %v203_v9  ;;  %v92_v44 = vsel %vm1404_vm11, 1.0, %v1166_v4  ;;  %v93_v47 = vsel %vm1423_vm15, 1.0, %v1166_v4  ;;  %v1107_v50 = vpack.c.bf16 %v191_v5, %v185_v3 }
  0x1f   :  { %vm1474_vm2 = vmand %vm45_vm8, %vm63_vm10  ;;  %v215_v26 = vand.u32 4294901760, %v1468_v14  ;;  %v199_v51 = vand.u32 4294901760, %v198_v34  ;;  %v1035_v53 = vpack.c.bf16 %v193_v40, %v187_v39  ;;  %v210_v59 = vsub.f32 %v1458_v10, %v209_v24 }
  0x20   :  { %1024 = vmatpush3.bf16.msk.msra.mxu1 %vm1386_vm0, %v1167_v17  ;;  %1096 = vmatpush3.bf16.msk.msra.mxu0 %vm1386_vm0, %v1167_v17  ;;  %vm1502_vm14 = vmpackc.low %vm1474_vm2, %vm1464_vm13  ;;  %v205_v58 = vand.u32 4294901760, %v204_v41  ;;  %v233_v57 = vand.u32 4294901760, %v1533_v48  ;;  %v239_v61 = vand.u32 4294901760, %v1535_v49  ;;  %v1549_v63 = vsub.f32 %v92_v44, %v92_v44 }
  0x21   :  { %1025 = vmatprep.subr.bf16.mxu1 %v1164_v1  ;;  %1097 = vmatprep.subr.bf16.mxu0 %v1164_v1  ;;  %v216_v60 = vsub.f32 %v1468_v14, %v215_v26  ;;  %v1551_v0 = vsub.f32 %v93_v47, %v93_v47  ;;  %vm1715_vm7 = vmmov 0   ;;  %v95_v3 = vsel %vm1474_vm2, 1.0, %v1166_v4 }
  0x22   :  { %v1110_v5 = vpack.c.bf16 %v203_v9, %v197_v18  ;;  %v222_v12 = vsub.f32 %v1507_v27, %v221_v45  ;;  %v1038_v13 = vpack.c.bf16 %v205_v58, %v199_v51  ;;  %v211_v19 = vand.u32 4294901760, %v210_v59 }
  0x23   :  { %v217_v20 = vand.u32 4294901760, %v216_v60  ;;  %v228_v22 = vsub.f32 %v1509_v29, %v227_v46  ;;  %v245_v11 = vand.u32 4294901760, %v1549_v63  ;;  %v251_v6 = vand.u32 4294901760, %v1551_v0 }
  0x24   :  { %1027 = vmatpush3.bf16.msk.msra.mxu1 %vm1454_vm5, %v1167_v17  ;;  %1099 = vmatpush3.bf16.msk.msra.mxu0 %vm1454_vm5, %v1167_v17  ;;  %v1571_v18 = vsub.f32 %v95_v3, %v95_v3  ;;  %v1113_v9 = vpack.c.bf16 %v215_v26, %v209_v24  ;;  %v223_v23 = vand.u32 4294901760, %v222_v12  ;;  %v1116_v39 = vpack.c.bf16 %v227_v46, %v221_v45 }
  0x25   :  { %1028 = vmatprep.subr.bf16.mxu1 %v1164_v1  ;;  %1100 = vmatprep.subr.bf16.mxu0 %v1164_v1  ;;  %v1041_v30 = vpack.c.bf16 %v217_v20, %v211_v19  ;;  %v229_v31 = vand.u32 4294901760, %v228_v22  ;;  %v246_v24 = vsub.f32 %v1549_v63, %v245_v11  ;;  %v252_v44 = vsub.f32 %v1551_v0, %v251_v6 }
  0x26   :  { %v1119_v47 = vpack.c.bf16 %v239_v61, %v233_v57  ;;  %v1122_v59 = vpack.c.bf16 %v251_v6, %v245_v11  ;;  %v1056_v3 = vpack.c.bf16 %v1322_v37, %v1306_v35  ;;  %vm1716_vm3 = vnez %v1671_v15 }
  0x27   :  { %v1044_v26 = vpack.c.bf16 %v229_v31, %v223_v23  ;;  %vm1717_vm12 = vnez %v1677_v21  ;;  %v1062_v15 = vpack.c.bf16 %v1442_v7, %v1427_v62  ;;  %vm1718_vm11 = vnez %v1683_v28 }
  0x28   :  { %1030 = vmatpush3.bf16.msk.msra.mxu1 %vm1502_vm14, %v1167_v17  ;;  %1102 = vmatpush3.bf16.msk.msra.mxu0 %vm1502_vm14, %v1167_v17  ;;  %v1068_v21 = vpack.c.bf16 %v1509_v29, %v1507_v27  ;;  %v1071_v28 = vpack.c.bf16 %v1535_v49, %v1533_v48  ;;  %v1074_v35 = vpack.c.bf16 %v1551_v0, %v1549_v63 }
  0x29   :  { %1031 = vmatprep.subr.bf16.mxu1 %v1164_v1  ;;  %1103 = vmatprep.subr.bf16.mxu0 %v1164_v1 }
  0x2b   :  { %830 = vmatmul.mubr.f32.vlgmr.msra.gmra.mrb[0].mxu1 %v165_v32  ;;  %935 = vmatmul.mubr.f32.vlgmr.msra.gmra.mrb[0].mxu0 %v163_v2  ;;  %v94_v2 = vsel %vm1464_vm13, 1.0, %v1166_v4  ;;  %v234_v32 = vsub.f32 %v1533_v48, %v233_v57 }
  0x2c   :  { %1033 = vmatpush3.bf16.msra.mxu1 %v1032_v33  ;;  %1105 = vmatpush3.bf16.msra.mxu0 %v1104_v38  ;;  %v1569_v16 = vsub.f32 %v94_v2, %v94_v2  ;;  %v240_v33 = vsub.f32 %v1535_v49, %v239_v61  ;;  %v263_v38 = vand.u32 4294901760, %v1571_v18 }
  0x2d   :  { %1034 = vmatprep.subr.bf16.mxu1 %v1164_v1  ;;  %1106 = vmatprep.subr.bf16.mxu0 %v1164_v1  ;;  %v235_v40 = vand.u32 4294901760, %v234_v32 }
  0x2e   :  { %864 = vmatprep.mubr.msk.f32.mxu1 %vm1715_vm7, %v1166_v4  ;;  %969 = vmatprep.mubr.msk.f32.mxu0 %vm1715_vm7, %v1166_v4  ;;  %v257_v34 = vand.u32 4294901760, %v1569_v16  ;;  %v241_v41 = vand.u32 4294901760, %v240_v33  ;;  %v264_v46 = vsub.f32 %v1571_v18, %v263_v38  ;;  %v1077_v36 = vpack.c.bf16 %v1571_v18, %v1569_v16 }
  0x30   :  { %1036 = vmatpush3.bf16.msra.mxu1 %v1035_v53  ;;  %1108 = vmatpush3.bf16.msra.mxu0 %v1107_v50  ;;  %v247_v50 = vand.u32 4294901760, %v246_v24  ;;  %v1047_v51 = vpack.c.bf16 %v241_v41, %v235_v40  ;;  %v253_v53 = vand.u32 4294901760, %v252_v44  ;;  %v258_v45 = vsub.f32 %v1569_v16, %v257_v34 }
  0x31   :  { %1037 = vmatprep.subr.bf16.mxu1 %v1164_v1  ;;  %1109 = vmatprep.subr.bf16.mxu0 %v1164_v1  ;;  %v265_v2 = vand.u32 4294901760, %v264_v46  ;;  %v1125_v61 = vpack.c.bf16 %v263_v38, %v257_v34 }
  0x32   :  { %v1050_v58 = vpack.c.bf16 %v253_v53, %v247_v50  ;;  %v259_v60 = vand.u32 4294901760, %v258_v45 }
  0x34   :  { %1039 = vmatpush3.bf16.msra.mxu1 %v1038_v13  ;;  %1111 = vmatpush3.bf16.msra.mxu0 %v1110_v5  ;;  %v1053_v57 = vpack.c.bf16 %v265_v2, %v259_v60  ;;  %v1059_v5 = vpack.c.bf16 %v1396_v56, %v1394_v55 }
  0x35   :  { %1040 = vmatprep.subr.bf16.mxu1 %v1164_v1  ;;  %1112 = vmatprep.subr.bf16.mxu0 %v1164_v1 }
  0x38   :  { %1042 = vmatpush3.bf16.msra.mxu1 %v1041_v30  ;;  %1114 = vmatpush3.bf16.msra.mxu0 %v1113_v9 }
  0x39   :  { %1043 = vmatprep.subr.bf16.mxu1 %v1164_v1  ;;  %1115 = vmatprep.subr.bf16.mxu0 %v1164_v1 }
  0x3c   :  { %1045 = vmatpush3.bf16.msra.mxu1 %v1044_v26  ;;  %1117 = vmatpush3.bf16.msra.mxu0 %v1116_v39 }
  0x3d   :  { %1046 = vmatprep.subr.bf16.mxu1 %v1164_v1  ;;  %1118 = vmatprep.subr.bf16.mxu0 %v1164_v1 }
  0x40   :  { %1048 = vmatpush3.bf16.msra.mxu1 %v1047_v51  ;;  %1120 = vmatpush3.bf16.msra.mxu0 %v1119_v47 }
  0x41   :  { %1049 = vmatprep.subr.bf16.mxu1 %v1164_v1  ;;  %1121 = vmatprep.subr.bf16.mxu0 %v1164_v1 }
  0x44   :  { %1051 = vmatpush3.bf16.msra.mxu1 %v1050_v58  ;;  %1123 = vmatpush3.bf16.msra.mxu0 %v1122_v59 }
  0x45   :  { %1052 = vmatprep.subr.bf16.mxu1 %v1164_v1  ;;  %1124 = vmatprep.subr.bf16.mxu0 %v1164_v1 }
  0x48   :  { %1054 = vmatpush3.bf16.msra.mxu1 %v1053_v57  ;;  %1126 = vmatpush3.bf16.msra.mxu0 %v1125_v61 }
  0x49   :  { %1055 = vmatprep.subr.bf16.mxu1 %v1164_v1  ;;  %1127 = vmatprep.subr.bf16.mxu0 %v1164_v1 }
  0x4b   :  { %865 = vmatmul.mubr.f32.vlgmr.msra.gmra.mrb[0].mxu1 %v1348_v43  ;;  %970 = vmatmul.mubr.f32.vlgmr.msra.gmra.mrb[0].mxu0 %v1348_v43 }
  0x4c   :  { %1057 = vmatpush3.bf16.msra.mxu1 %v1056_v3  ;;  %1129 = vmatpush3.bf16.msk.msra.mxu0 %vm1716_vm3, %v1167_v17 }
  0x4d   :  { %1058 = vmatprep.subr.bf16.mxu1 %v1164_v1  ;;  %1130 = vmatprep.subr.bf16.mxu0 %v1164_v1 }
  0x4e   :  { %899 = vmatprep.mubr.msk.f32.mxu1 %vm1715_vm7, %v1166_v4  ;;  %1004 = vmatprep.mubr.msk.f32.mxu0 %vm1715_vm7, %v1166_v4  ;;  %v1065_v4 = vpack.c.bf16 %v1468_v14, %v1458_v10 }
  0x50   :  { %1060 = vmatpush3.bf16.msra.mxu1 %v1059_v5  ;;  %1132 = vmatpush3.bf16.msk.msra.mxu0 %vm1717_vm12, %v1167_v17 }
  0x51   :  { %1061 = vmatprep.subr.bf16.mxu1 %v1164_v1  ;;  %1133 = vmatprep.subr.bf16.mxu0 %v1164_v1 }
  0x54   :  { %1063 = vmatpush3.bf16.msra.mxu1 %v1062_v15  ;;  %1135 = vmatpush3.bf16.msk.msra.mxu0 %vm1718_vm11, %v1167_v17 }
  0x55   :  { %1064 = vmatprep.subr.bf16.mxu1 %v1164_v1  ;;  %1136 = vmatprep.subr.bf16.mxu0 %v1164_v1 }
  0x58   :  { %1066 = vmatpush3.bf16.msra.mxu1 %v1065_v4  ;;  %1138 = vmatpush3.bf16.msk.msra.mxu0 %vm1318_vm6, %v1167_v17  ;;  %vm641_vm6 = vcmask 31744  }
  0x59   :  { %1067 = vmatprep.subr.bf16.mxu1 %v1164_v1  ;;  %1139 = vmatprep.subr.bf16.mxu0 %v1164_v1 }
  0x5c   :  { %1069 = vmatpush3.bf16.msra.mxu1 %v1068_v21  ;;  %1141 = vmatpush3.bf16.msk.msra.mxu0 %vm1344_vm1, %v1167_v17 }
  0x5d   :  { %1070 = vmatprep.subr.bf16.mxu1 %v1164_v1  ;;  %1142 = vmatprep.subr.bf16.mxu0 %v1164_v1 }
  0x60   :  { %1072 = vmatpush3.bf16.msra.mxu1 %v1071_v28  ;;  %1144 = vmatpush3.bf16.msk.msra.mxu0 %vm1386_vm0, %v1167_v17 }
  0x61   :  { %1073 = vmatprep.subr.bf16.mxu1 %v1164_v1  ;;  %1145 = vmatprep.subr.bf16.mxu0 %v1164_v1 }
  0x64   :  { %1075 = vmatpush3.bf16.msra.mxu1 %v1074_v35  ;;  %1147 = vmatpush3.bf16.msk.msra.mxu0 %vm1454_vm5, %v1167_v17 }
  0x65   :  { %1076 = vmatprep.subr.bf16.mxu1 %v1164_v1  ;;  %1148 = vmatprep.subr.bf16.mxu0 %v1164_v1 }
  0x68   :  { %1078 = vmatpush3.bf16.msra.mxu1 %v1077_v36  ;;  %1150 = vmatpush3.bf16.msk.msra.mxu0 %vm1502_vm14, %v1167_v17 }
  0x6b   :  { %900 = vmatmul.mubr.f32.vlgmr.msra.gmra.mrb[0].mxu1 %v1392_v54  ;;  %1005 = vmatmul.mubr.f32.vlgmr.msra.gmra.mrb[0].mxu0 %v1348_v43 }
 0x13e   :  { %v390_v37 = vpop.f32.mrb[0].mxu1  ;;  %v637_v42 = vpop.f32.mrb[0].mxu0 }
 0x13f   :  { %v1151_v52 = vadd.f32 %v637_v42, %v390_v37  ;;  %v901_v55 = vpop.f32.mrb[1].mxu1  ;;  %v1006_v56 = vpop.f32.mrb[1].mxu0 }
 0x141   :  { %642 = vst.msk [vmem:[%s1659_s1] sm:$0xff] %vm641_vm6, %v1151_v52 }

</bundles_post_ra>
